<compile_context>
chip_gen: v7x
topology: tpu7x:2x2x1
jax: 0.10.0
libtpu: 0.0.40
codegen_flags: <defaults>
</compile_context>

<pallas_src>
import numpy as np
import jax
import jax.numpy as jnp
from jax.experimental import pallas as pl
from jax.experimental.pallas import tpu as pltpu

_MIB = 1024 * 1024


# --------------------------------------------------------------------------- #
# Kernels
# --------------------------------------------------------------------------- #
def _spatial_softmax_kernel_mxu(invt_ref, feat_ref, tab_ref, out_ref):
    # invt_ref: SMEM (1,) f32   -- 1/temperature (computed on host)
    # feat_ref: VMEM (tm, L)    -- block of feature rows (native dtype)
    # tab_ref : VMEM (L, 128)   -- columns [1, pos_x, pos_y, 0, ...]
    # out_ref : VMEM (tm, 2)    -- expected (x, y) per row
    x = feat_ref[...].astype(jnp.float32) * invt_ref[0]        # cast in VMEM (free)
    m = jnp.max(x, axis=-1, keepdims=True)                      # only cross-lane pass kept on XLU
    e = jnp.exp(x - m)                                           # EUP

    # One MXU contraction yields sum(e), sum(e*pos_x), sum(e*pos_y) in columns
    # 0..2, retiring 3 XLU lane reductions.  Kept in f32 (multi-pass MXU
    # lowering) so the weighted-coordinate sums hold 1e-5 tolerance.
    r = jnp.dot(e, tab_ref[...], preferred_element_type=jnp.float32,
                precision=jax.lax.Precision.HIGHEST)             # (tm, 128)

    inv_s = pl.reciprocal(r[:, 0:1], approx=False)               # (tm, 1)
    out_ref[...] = (r[:, 1:3] * inv_s).astype(out_ref.dtype)     # single store per block


def _spatial_softmax_kernel_xlu(invt_ref, feat_ref, pos_ref, out_ref):
    # v5e path: HBM-bound with 3 XLUs, so VPU multiply + XLU lane reductions.
    # pos_ref: VMEM (2, L) -- [pos_x; pos_y]
    x = feat_ref[...].astype(jnp.float32) * invt_ref[0]
    m = jnp.max(x, axis=-1, keepdims=True)
    e = jnp.exp(x - m)
    s = jnp.sum(e, axis=-1, keepdims=True)                       # (tm, 1)
    num_x = jnp.sum(e * pos_ref[0:1, :], axis=-1, keepdims=True)  # (tm, 1)
    num_y = jnp.sum(e * pos_ref[1:2, :], axis=-1, keepdims=True)  # (tm, 1)
    inv_s = pl.reciprocal(s, approx=False)
    out_ref[...] = (jnp.concatenate([num_x, num_y], axis=-1)     # single store per block
                    * inv_s).astype(out_ref.dtype)


# --------------------------------------------------------------------------- #
# Sizing / configuration helpers
# --------------------------------------------------------------------------- #
def _vmem_config():
    """Generation-aware (scoped-VMEM limit, input pipeline depth).

    v5e/v6e: 128 MiB physical -> raise the limit well past the 16/32 MiB scoped
             defaults and use 3-deep input buffering (hides DMA jitter, zero
             VMEM risk on these chips).
    v7x:      64 MiB physical -> cap the limit at 44 MiB, default double buffer.
    Unknown:  conservative v7x-safe settings.
    """
    try:
        cap = int(pltpu.get_tpu_info().vmem_capacity_bytes)
    except Exception:
        cap = 0
    if cap >= 100 * _MIB:
        return 80 * _MIB, 3
    return 44 * _MIB, 2


def _use_mxu_default():
    """MXU contraction on v6e/v7x (2 XLUs, fast HBM); XLU reductions on v5e."""
    try:
        kind = jax.devices()[0].device_kind.lower()
    except Exception:
        return True
    if "v5e" in kind or "v5 lite" in kind or "v5lite" in kind:
        return False
    return True


def _pick_row_tile(NC, L, in_itemsize, *, vmem_limit_bytes, buffer_count,
                   pos_table_bytes, target_block_bytes=8 * _MIB,
                   min_grid_steps=2):
    """Row tile (multiple of 8) from:
       (a) a ~2-8 MiB streamed-input block-bytes target (HBM DMA efficiency),
       (b) the true per-row VMEM footprint: pipelined native-dtype input
           buffers + the two (tm, L) f32 temps (x, e) the kernel materializes
           + MXU result row + double-buffered output,
       (c) a >= min_grid_steps floor so the "parallel" row axis keeps both v7x
           TensorCores busy (ideally 4-8 steps on large problems),
       (d) never more than the (8-rounded) number of rows."""
    tm = max(8, target_block_bytes // max(1, L * in_itemsize))                 # (a)

    per_row = (buffer_count * L * in_itemsize      # pipelined feature buffers
               + 2 * L * 4                         # f32 temps: x and e
               + 128 * 4                           # MXU result row
               + 2 * 2 * 4)                        # double-buffered output row
    budget = int(vmem_limit_bytes * 0.7) - pos_table_bytes                     # (b)
    tm = min(tm, max(8, budget // per_row))

    tm = min(tm, max(8, (NC + min_grid_steps - 1) // min_grid_steps))          # (c)
    tm = min(tm, ((NC + 7) // 8) * 8)                                          # (d)
    return max(8, (tm // 8) * 8)


def _feature_block_spec(tm, L, buffer_count):
    index_map = lambda i: (i, 0)
    if buffer_count > 2 and hasattr(pl, "Buffered"):
        try:
            return pl.BlockSpec((tm, L), index_map,
                                pipeline_mode=pl.Buffered(buffer_count))
        except TypeError:
            pass  # older API without pipeline_mode: fall back to default depth
    return pl.BlockSpec((tm, L), index_map)


# --------------------------------------------------------------------------- #
# Wrapper
# --------------------------------------------------------------------------- #
def spatial_softmax(feature, pos_xy, temperature=1.0, *, data_format="NCHW",
                    tm=None, use_mxu=None, vmem_limit_bytes=None):
    """feature: (N, C, H, W) if NCHW, (N, H, W, C) if NHWC.  Returns (N, C, 2)."""
    if data_format == "NHWC":
        # TODO(synk): add a C-on-lanes kernel variant (softmax/reduce over the
        # spatial axis tiled on sublanes) so NHWC callers skip this extra HBM
        # read+write before a memory-bound kernel.
        feature = jnp.transpose(feature, (0, 3, 1, 2))
    N, C, H, W = feature.shape
    L = H * W
    NC = N * C

    # Zero-copy view; feature streams in its native dtype (cast in VMEM).
    flat = feature.reshape(NC, L)

    if use_mxu is None:
        use_mxu = _use_mxu_default()
    limit, buffer_count = _vmem_config()
    if vmem_limit_bytes is None:
        vmem_limit_bytes = limit

    pos_xy = pos_xy.astype(jnp.float32)                        # (2, L)
    if use_mxu:
        # (L, 128) table with columns [1, pos_x, pos_y, 0...]: one MXU matmul
        # per block yields sum(e), sum(e*px), sum(e*py).
        table = jnp.zeros((L, 128), jnp.float32)
        table = table.at[:, 0].set(1.0)
        table = table.at[:, 1].set(pos_xy[0])
        table = table.at[:, 2].set(pos_xy[1])
        kernel = _spatial_softmax_kernel_mxu
    else:
        table = pos_xy
        kernel = _spatial_softmax_kernel_xlu
    pos_table_bytes = int(np.prod(table.shape)) * 4

    in_itemsize = jnp.dtype(flat.dtype).itemsize
    if tm is None:
        tm = _pick_row_tile(NC, L, in_itemsize,
                            vmem_limit_bytes=vmem_limit_bytes,
                            buffer_count=buffer_count,
                            pos_table_bytes=pos_table_bytes)

    # Host-side 1/temperature: kernel does a plain scalar multiply.
    inv_temp = jnp.reshape(1.0 / jnp.asarray(temperature, jnp.float32),
                           (1,)).astype(jnp.float32)

    # TODO(synk): for very large L (tm*L*4 approaching ~8-16 MiB, i.e. >= ~8-16K
    # positions, half that threshold on v7x's 64 MiB VMEM) add a second
    # ("arbitrary", last) grid axis over L with online-softmax accumulators so
    # tm (and DMA efficiency) stays high instead of shrinking the row tile.
    out = pl.pallas_call(
        kernel,
        out_shape=jax.ShapeDtypeStruct((NC, 2), jnp.float32),
        grid=(pl.cdiv(NC, tm),),
        in_specs=[
            pl.BlockSpec(memory_space=pltpu.MemorySpace.SMEM),   # 1/temperature
            _feature_block_spec(tm, L, buffer_count),            # feature rows
            pl.BlockSpec(table.shape, lambda i: (0, 0)),          # pos table (fetched once)
        ],
        out_specs=pl.BlockSpec((tm, 2), lambda i: (i, 0)),
        compiler_params=pltpu.CompilerParams(
            dimension_semantics=("parallel",),   # row axis shards across v7x's 2 TCs
            vmem_limit_bytes=int(vmem_limit_bytes),
        ),
    )(inv_temp, flat, table)

    return out.reshape(N, C, 2)


# --------------------------------------------------------------------------- #
# Position table + pure-JAX reference
# --------------------------------------------------------------------------- #
def make_pos_table(height, width):
    # NOTE: intentionally mirrors the PyTorch buffer construction, including the
    # meshgrid quirk (linspace over `height` feeds pos_x).  Do not "fix" this —
    # it is parity with the reference module and matters when H != W.
    pos_x, pos_y = np.meshgrid(
        np.linspace(-1.0, 1.0, height), np.linspace(-1.0, 1.0, width)
    )
    pos_x = pos_x.reshape(-1).astype(np.float32)
    pos_y = pos_y.reshape(-1).astype(np.float32)
    return jnp.asarray(np.stack([pos_x, pos_y], axis=0))        # (2, H*W)


def spatial_softmax_ref(feature, pos_xy, temperature=1.0):
    """Pure-JAX reference mirroring the PyTorch forward."""
    N, C, H, W = feature.shape
    flat = feature.reshape(N * C, H * W).astype(jnp.float32) / temperature
    w = jax.nn.softmax(flat, axis=-1)
    ex = jnp.sum(pos_xy[0] * w, axis=1, keepdims=True)
    ey = jnp.sum(pos_xy[1] * w, axis=1, keepdims=True)
    return jnp.concatenate([ex, ey], axis=1).reshape(N, C, 2)


# --------------------------------------------------------------------------- #
# Demo / self-test
# --------------------------------------------------------------------------- #
if __name__ == "__main__":
    key = jax.random.PRNGKey(0)

    # Small NCHW shapes: batch=2, channels=4, spatial 16x16 (NC=8, L=256).
    N, C, H, W = 2, 4, 16, 16
    temperature = 1.0   # default path (no learned temperature Parameter)
    feature = jax.random.normal(key, (N, C, H, W), dtype=jnp.float32)
    pos_xy = make_pos_table(H, W)
    ref = spatial_softmax_ref(feature, pos_xy, temperature)

    # Exercise both kernel variants so whichever path the current TPU
    # generation auto-selects (MXU contraction vs XLU reductions) is covered.
    for use_mxu in (True, False):
        out = jax.block_until_ready(
            spatial_softmax(feature, pos_xy, temperature,
                            data_format="NCHW", use_mxu=use_mxu))
        assert out.shape == (N, C, 2), out.shape
        np.testing.assert_allclose(np.asarray(out), np.asarray(ref),
                                   rtol=1e-5, atol=1e-5)

    # Ragged row count (NC = 15, not a multiple of the 8-row tile): the padded
    # rows of the last block go through exp() but are dropped on writeback.
    N2, C2, H2, W2 = 3, 5, 16, 8
    feat2 = jax.random.normal(jax.random.PRNGKey(1), (N2, C2, H2, W2),
                              dtype=jnp.float32)
    pos2 = make_pos_table(H2, W2)
    ref2 = spatial_softmax_ref(feat2, pos2, temperature)
    out2 = jax.block_until_ready(spatial_softmax(feat2, pos2, temperature))
    assert out2.shape == (N2, C2, 2), out2.shape
    np.testing.assert_allclose(np.asarray(out2), np.asarray(ref2),
                               rtol=1e-5, atol=1e-5)

    print("KERNEL_OK")
</pallas_src>

<mosaic_0001>
module attributes {stable_mosaic.version = 11 : i64} {
  func.func @_spatial_softmax_kernel_mxu(%arg0: i32, %arg1: memref<1xf32, #tpu.memory_space<smem>>, %arg2: memref<8x256xf32, #tpu.memory_space<vmem>>, %arg3: memref<256x128xf32, #tpu.memory_space<vmem>>, %arg4: memref<8x2xf32, #tpu.memory_space<vmem>>) attributes {dimension_semantics = [#tpu.dimension_semantics<parallel>], iteration_bounds = array<i64: 1>, scalar_prefetch = 0 : i64, scratch_operands = 0 : i64, tpu.core_type = #tpu.core_type<tc>, window_params = [{transform_indices = @transform_0, window_bounds = array<i64: 1>}, {transform_indices = @transform_1, window_bounds = array<i64: 8, 256>}, {pipeline_mode = #tpu.pipeline_mode<synchronous>, transform_indices = @transform_2, window_bounds = array<i64: 256, 128>}, {transform_indices = @transform_3, window_bounds = array<i64: 8, 2>}]} {
    %c0 = arith.constant 0 : index
    %c0_0 = arith.constant 0 : index
    %0 = vector.load %arg2[%c0, %c0_0] : memref<8x256xf32, #tpu.memory_space<vmem>>, vector<8x256xf32>
    %c0_1 = arith.constant 0 : index
    %1 = memref.load %arg1[%c0_1] : memref<1xf32, #tpu.memory_space<smem>>
    %2 = vector.broadcast %1 : f32 to vector<8x256xf32>
    %3 = arith.mulf %0, %2 : vector<8x256xf32>
    %cst = arith.constant dense<0xFF800000> : vector<8xf32>
    %4 = vector.multi_reduction <maximumf>, %3, %cst [1] : vector<8x256xf32> to vector<8xf32>
    %5 = vector.shape_cast %4 : vector<8xf32> to vector<8x1xf32>
    %6 = vector.broadcast %5 : vector<8x1xf32> to vector<8x256xf32>
    %7 = arith.subf %3, %6 : vector<8x256xf32>
    %8 = math.exp %7 : vector<8x256xf32>
    %c0_2 = arith.constant 0 : index
    %c0_3 = arith.constant 0 : index
    %9 = vector.load %arg3[%c0_2, %c0_3] : memref<256x128xf32, #tpu.memory_space<vmem>>, vector<256x128xf32>
    %cst_4 = arith.constant dense<0.000000e+00> : vector<8x128xf32>
    %10 = tpu.matmul %8, %9, %cst_4 {dimension_numbers = #tpu.dot_dimension_numbers<[1], [0], [0], [1], [0, 0, 1, 1], [], []>, precision = #tpu.contract_precision<fp32>} : vector<8x256xf32>, vector<256x128xf32>, vector<8x128xf32> -> vector<8x128xf32>
    %11 = vector.extract_strided_slice %10 {offsets = [0, 0], sizes = [8, 1], strides = [1, 1]} : vector<8x128xf32> to vector<8x1xf32>
    %12 = tpu.reciprocal %11 : vector<8x1xf32> -> vector<8x1xf32>
    %13 = vector.extract_strided_slice %10 {offsets = [0, 1], sizes = [8, 2], strides = [1, 1]} : vector<8x128xf32> to vector<8x2xf32>
    %14 = vector.broadcast %12 : vector<8x1xf32> to vector<8x2xf32>
    %15 = arith.mulf %13, %14 : vector<8x2xf32>
    %c0_5 = arith.constant 0 : index
    %c0_6 = arith.constant 0 : index
    %16 = vector.load %arg4[%c0_5, %c0_6] : memref<8x2xf32, #tpu.memory_space<vmem>>, vector<8x2xf32>
    tpu.vector_store %arg4[%c0_5, %c0_6], %15 {strides = array<i32>} : memref<8x2xf32, #tpu.memory_space<vmem>>, vector<8x2xf32>,
    return
  }
  func.func @transform_0(%arg0: i32) -> i32 {
    %c0_i32 = arith.constant 0 : i32
    %c0_i32_0 = arith.constant 0 : i32
    return %c0_i32 : i32
  }
  func.func @transform_1(%arg0: i32) -> (i32, i32) {
    %c0_i32 = arith.constant 0 : i32
    %c0_i32_0 = arith.constant 0 : i32
    return %arg0, %c0_i32 : i32, i32
  }
  func.func @transform_2(%arg0: i32) -> (i32, i32) {
    %c0_i32 = arith.constant 0 : i32
    %c0_i32_0 = arith.constant 0 : i32
    %c0_i32_1 = arith.constant 0 : i32
    return %c0_i32, %c0_i32_0 : i32, i32
  }
  func.func @transform_3(%arg0: i32) -> (i32, i32) {
    %c0_i32 = arith.constant 0 : i32
    %c0_i32_0 = arith.constant 0 : i32
    return %arg0, %c0_i32 : i32, i32
  }
}

</mosaic_0001>

<bundles_post_ra>
// kernel: tpu_custom_call.1
= control target key start
LH: loop header
LB: loop body
LE: loop exit
PB: predicated region body
PF: predicated region fallthrough
CT: control target
= control target key end

     0   :  { %9 = vsyncpa [#allocation4], 0  ;;  %s1993_s0 = inlined_call_operand.<no memory space> [shape: f32[1], index: 0, kind: input, shape index: {}]   ;;  %s1994_s1 = inlined_call_operand.hbm [shape: f32[8,256], index: 1, kind: input, shape index: {}]   ;;  %s1995_s2 = inlined_call_operand.hbm [shape: f32[256,128], index: 2, kind: input, shape index: {}]   ;;  %s1996_s3 = inlined_call_operand.vmem [shape: f32[8,2], index: 3, kind: output, shape index: {}]  }
   0x1   :  { %10 = vsyncpa [#allocation6], 0  ;;  %s1432_s12 = smov [#allocation3]   ;;  %s1433_s14 = smov [#allocation5]  }
   0x2   :  { %s19_s13 = sshll.u32 %s1432_s12, 4  ;;  %s28_s15 = sshll.u32 %s1433_s14, 4  ;;  %s20_s13 = int_to_ptr.vmem [resolvable:$true] %s19_s13  ;;  %s1458_s15 = int_to_ptr.vmem [resolvable:$true] %s28_s15 }
   0x3   :  { %s1384_s18 = scalar_lea.hbm %s1994_s1, 256 }
   0x4   :  { %p1385_p0 = scmp.ne.s32.totalorder %s1994_s1, %s1384_s18  ;;  %p1388_p1 = scmp.lt.u32.totalorder %s1384_s18, %s1994_s1 }
   0x6   :  { %p1390_p2 = pnand %p1388_p1, %p1385_p0 }
   0x8   :  { %1393 = shalt.err (!%p1390_p2)
}
   0x9   :  { %s1394_s23 = scalar_lea.vmem %s20_s13, 256  ;;  %p1399_p4 = scmp.lt.s32.totalorder %s20_s13, %s20_s13 }
   0xa   :  { %p1395_p3 = scmp.ne.s32.totalorder %s20_s13, %s1394_s23  ;;  %p1400_p5 = scmp.lt.s32.totalorder %s1394_s23, %s1394_s23 }
   0xc   :  { %p1401_p6 = por %p1400_p5, %p1399_p4 }
   0xe   :  { %p1402_p7 = pnand %p1401_p6, %p1395_p3 }
  0x10   :  { %1405 = shalt.err (!%p1402_p7)
}
  0x11   :  { %22 = dma.hbm_to_vmem [thread:$0]  %s1994_s1, 256, %s20_s13, [#allocation4]  }
  0x12   :  { %s1406_s28 = scalar_lea.hbm %s1995_s2, 4096 }
  0x13   :  { %p1407_p8 = scmp.ne.s32.totalorder %s1995_s2, %s1406_s28  ;;  %p1410_p9 = scmp.lt.u32.totalorder %s1406_s28, %s1995_s2 }
  0x15   :  { %p1412_p10 = pnand %p1410_p9, %p1407_p8 }
  0x17   :  { %1415 = shalt.err (!%p1412_p10)
}
  0x18   :  { %s1416_s6 = scalar_lea.vmem %s1458_s15, 4096  ;;  %p1421_p12 = scmp.lt.s32.totalorder %s1458_s15, %s1458_s15 }
  0x19   :  { %p1417_p11 = scmp.ne.s32.totalorder %s1458_s15, %s1416_s6  ;;  %p1422_p13 = scmp.lt.s32.totalorder %s1416_s6, %s1416_s6 }
  0x1b   :  { %p1423_p0 = por %p1422_p13, %p1421_p12 }
  0x1d   :  { %p1424_p1 = pnand %p1423_p0, %p1417_p11 }
  0x1f   :  { %1427 = shalt.err (!%p1424_p1)
}
  0x20   :  { %s1434_s1 = smov 128   ;;  %s1435_s7 = smov 8  }
  0x21   :  { %34 = dma.hbm_to_vmem [thread:$0]  %s1995_s2, 4096, %s1458_s15, [#allocation6], %s1434_s1, %s1434_s1, %s1435_s7  }
  0x22   :  { %1428 = dma.done.wait [#allocation4], 256  }
  0x23   :  { %1429 = vsyncadd [#allocation4], 4294967040 }
  0x24   :  { %1430 = dma.done.wait [#allocation6], 4096  }
  0x25   :  { %1431 = vsyncadd [#allocation6], 4294963200  ;;  %v44_v0 = vstv %s1993_s0  ;;  %v41_v1 = vld [vmem:[#allocation3] sm:$0xff]  ;;  %v42_v2 = vld [vmem:[#allocation3 + $0x8] sm:$0xff]  ;;  %s1437_s0 = smov 127   ;;  %vm961_vm0 = vcmask 15360  }
  0x26   :  { %v72_v3 = vld [vmem:[#allocation5 + $0x80] sm:$0xff]  ;;  %v1492_v4 = vmul.f32 %v44_v0, %v41_v1  ;;  %v1494_v5 = vmul.f32 %v44_v0, %v42_v2  ;;  %v73_v6 = vld [vmem:[#allocation5 + $0x88] sm:$0xff]  ;;  %v74_v13 = vld [vmem:[#allocation5 + $0x90] sm:$0xff] }
  0x27   :  { %v137_v7 = vand.u32 4294901760, %v72_v3  ;;  %v56_v8 = vld [vmem:[#allocation5] sm:$0xff]  ;;  %v57_v9 = vld [vmem:[#allocation5 + $0x8] sm:$0xff]  ;;  %v140_v10 = vand.u32 4294901760, %v73_v6  ;;  %v75_v14 = vld [vmem:[#allocation5 + $0x98] sm:$0xff]  ;;  %v143_v18 = vand.u32 4294901760, %v74_v13 }
  0x28   :  { %v89_v11 = vand.u32 4294901760, %v56_v8  ;;  %v92_v12 = vand.u32 4294901760, %v57_v9  ;;  %v1496_v15 = vld [vmem:[#allocation5 + $0x10] sm:$0xff]  ;;  %v47_v16 = vmax.f32 %v1492_v4, %v1494_v5  ;;  %v146_v19 = vand.u32 4294901760, %v75_v14  ;;  %v1502_v20 = vld [vmem:[#allocation5 + $0x18] sm:$0xff]  ;;  %v1550_v45 = vld [vmem:[#allocation5 + $0xa0] sm:$0xff] }
  0x29   :  { %v1500_v17 = vsub.f32 %v72_v3, %v137_v7  ;;  %v1504_v21 = vsub.f32 %v73_v6, %v140_v10  ;;  %v95_v24 = vand.u32 4294901760, %v1496_v15  ;;  %v1512_v26 = vsub.f32 %v74_v13, %v143_v18  ;;  %v1555_v50 = vld [vmem:[#allocation5 + $0xa8] sm:$0xff]  ;;  %v1562_v55 = vld [vmem:[#allocation5 + $0x20] sm:$0xff]  ;;  %v1567_v61 = vld [vmem:[#allocation5 + $0xb0] sm:$0xff] }
  0x2a   :  { %v1506_v22 = vsub.f32 %v56_v8, %v89_v11  ;;  %v1508_v23 = vsub.f32 %v57_v9, %v92_v12  ;;  %48 = vmax.xlane.f32.xlu0 %v47_v16  ;;  %v1514_v27 = vsub.f32 %v75_v14, %v146_v19  ;;  %v98_v28 = vand.u32 4294901760, %v1502_v20  ;;  %v1564_v56 = vld [vmem:[#allocation5 + $0x28] sm:$0xff]  ;;  %v1569_v62 = vld [vmem:[#allocation5 + $0xb8] sm:$0xff]  ;;  %v1582_v9 = vld [vmem:[#allocation5 + $0x30] sm:$0xff] }
  0x2b   :  { %v2012_v25 = vand.u32 4294901760, %v1500_v17  ;;  %v2011_v29 = vand.u32 4294901760, %v1504_v21  ;;  %v1523_v32 = vsub.f32 %v1496_v15, %v95_v24  ;;  %v2008_v34 = vand.u32 4294901760, %v1512_v26  ;;  %v1590_v14 = vld [vmem:[#allocation5 + $0x38] sm:$0xff] }
  0x2c   :  { %v2010_v30 = vand.u32 4294901760, %v1506_v22  ;;  %v2009_v31 = vand.u32 4294901760, %v1508_v23  ;;  %v2007_v35 = vand.u32 4294901760, %v1514_v27  ;;  %v1531_v36 = vsub.f32 %v1502_v20, %v98_v28 }
  0x2d   :  { %v316_v33 = vsub.f32 %v1500_v17, %v2012_v25  ;;  %v323_v37 = vsub.f32 %v1504_v21, %v2011_v29  ;;  %v2006_v40 = vand.u32 4294901760, %v1523_v32  ;;  %v330_v42 = vsub.f32 %v1512_v26, %v2008_v34 }
  0x2e   :  { %v204_v38 = vsub.f32 %v1506_v22, %v2010_v30  ;;  %v211_v39 = vsub.f32 %v1508_v23, %v2009_v31  ;;  %v337_v43 = vsub.f32 %v1514_v27, %v2007_v35  ;;  %v2005_v44 = vand.u32 4294901760, %v1531_v36 }
  0x2f   :  { %v317_v41 = vand.u32 4294901760, %v316_v33  ;;  %v324_v46 = vand.u32 4294901760, %v323_v37  ;;  %v218_v49 = vsub.f32 %v1523_v32, %v2006_v40  ;;  %v331_v51 = vand.u32 4294901760, %v330_v42 }
  0x30   :  { %v205_v47 = vand.u32 4294901760, %v204_v38  ;;  %v212_v48 = vand.u32 4294901760, %v211_v39  ;;  %v338_v52 = vand.u32 4294901760, %v337_v43  ;;  %v225_v53 = vsub.f32 %v1531_v36, %v2005_v44 }
  0x31   :  { %v1560_v54 = vpack.c.bf16 %v140_v10, %v137_v7  ;;  %v1211_v57 = vpack.c.bf16 %v324_v46, %v317_v41  ;;  %v219_v59 = vand.u32 4294901760, %v218_v49  ;;  %v149_v60 = vand.u32 4294901760, %v1550_v45 }
  0x32   :  { %v1213_v58 = vpack.c.bf16 %v212_v48, %v205_v47  ;;  %v1215_v63 = vpack.c.bf16 %v338_v52, %v331_v51  ;;  %v226_v0 = vand.u32 4294901760, %v225_v53  ;;  %v152_v1 = vand.u32 4294901760, %v1555_v50 }
  0x33   :  { %1180 = vmatprep.subr.bf16.mxu0 %v1560_v54  ;;  %v1573_v2 = vpack.c.bf16 %v92_v12, %v89_v11  ;;  %1212 = vmatprep.subr.bf16.mxu1 %v1211_v57  ;;  %v1576_v3 = vsub.f32 %v1550_v45, %v149_v60  ;;  %v101_v6 = vand.u32 4294901760, %v1562_v55  ;;  %v104_v7 = vand.u32 4294901760, %v1564_v56  ;;  %v1649_v57 = vld [vmem:[#allocation5 + $0xc8] sm:$0xff] }
  0x34   :  { %v1580_v8 = vpack.c.bf16 %v146_v19, %v143_v18  ;;  %1214 = vmatpush3.bf16.msra.mxu1 %v1213_v58  ;;  %v1217_v10 = vpack.c.bf16 %v226_v0, %v219_v59  ;;  %v1585_v13 = vsub.f32 %v1555_v50, %v152_v1  ;;  %v155_v11 = vand.u32 4294901760, %v1567_v61  ;;  %v1654_v0 = vld [vmem:[#allocation5 + $0x40] sm:$0xff] }
  0x35   :  { %1182 = vmatpush3.bf16.msra.mxu0 %v1573_v2  ;;  %v158_v12 = vand.u32 4294901760, %v1569_v62  ;;  %1216 = vmatprep.subr.bf16.mxu1 %v1215_v63  ;;  %v2004_v16 = vand.u32 4294901760, %v1576_v3  ;;  %v1594_v18 = vsub.f32 %v1562_v55, %v101_v6  ;;  %v1597_v19 = vsub.f32 %v1564_v56, %v104_v7  ;;  %v1647_v56 = vld [vmem:[#allocation5 + $0xc0] sm:$0xff] }
  0x36   :  { %1184 = vmatprep.subr.bf16.mxu0 %v1580_v8  ;;  %v1602_v20 = vpack.c.bf16 %v98_v28, %v95_v24  ;;  %v2003_v33 = vand.u32 4294901760, %v1585_v13  ;;  %v1608_v37 = vsub.f32 %v1567_v61, %v155_v11  ;;  %v107_v39 = vand.u32 4294901760, %v1582_v9 }
  0x37   :  { %v1611_v38 = vsub.f32 %v1569_v62, %v158_v12  ;;  %v344_v41 = vsub.f32 %v1576_v3, %v2004_v16  ;;  %v2002_v15 = vand.u32 4294901760, %v1594_v18  ;;  %v2001_v24 = vand.u32 4294901760, %v1597_v19  ;;  %v1733_v16 = vld [vmem:[#allocation5 + $0xe0] sm:$0xff] }
  0x38   :  { %2045 = vst [vmem:[#allocation9_spill] sm:$0xff] %v1608_v37  ;;  %v110_v28 = vand.u32 4294901760, %v1590_v14  ;;  %1218 = vmatpush3.bf16.msra.mxu1 %v1217_v10  ;;  %v351_v42 = vsub.f32 %v1585_v13, %v2003_v33  ;;  %v1998_v43 = vand.u32 4294901760, %v1608_v37  ;;  %v1629_v46 = vsub.f32 %v1582_v9, %v107_v39 }
  0x39   :  { %2046 = vst [vmem:[#allocation10_spill] sm:$0xff] %v1611_v38  ;;  %v1997_v45 = vand.u32 4294901760, %v1611_v38  ;;  %1186 = vmatpush3.bf16.msra.mxu0 %v1602_v20  ;;  %v345_v47 = vand.u32 4294901760, %v344_v41  ;;  %v232_v48 = vsub.f32 %v1594_v18, %v2002_v15  ;;  %v239_v49 = vsub.f32 %v1597_v19, %v2001_v24 }
  0x3a   :  { %2047 = vst [vmem:[#allocation11_spill] sm:$0xff] %v1629_v46  ;;  %v1638_v50 = vsub.f32 %v1590_v14, %v110_v28  ;;  %v352_v51 = vand.u32 4294901760, %v351_v42  ;;  %v358_v52 = vsub.f32 %v1608_v37, %v1998_v43  ;;  %v2000_v55 = vand.u32 4294901760, %v1629_v46 }
  0x3b   :  { %v365_v53 = vsub.f32 %v1611_v38, %v1997_v45  ;;  %v233_v58 = vand.u32 4294901760, %v232_v48  ;;  %v240_v59 = vand.u32 4294901760, %v239_v49  ;;  %v1652_v63 = vpack.c.bf16 %v152_v1, %v149_v60  ;;  %v1659_v45 = vld [vmem:[#allocation5 + $0x48] sm:$0xff]  ;;  %v1669_v49 = vld [vmem:[#allocation5 + $0xd8] sm:$0xff] }
  0x3c   :  { %2048 = vst [vmem:[#allocation12_spill] sm:$0xff] %v1638_v50  ;;  %v1999_v62 = vand.u32 4294901760, %v1638_v50  ;;  %v1219_v10 = vpack.c.bf16 %v352_v51, %v345_v47  ;;  %v359_v14 = vand.u32 4294901760, %v358_v52  ;;  %v246_v42 = vsub.f32 %v1629_v46, %v2000_v55  ;;  %v1667_v47 = vld [vmem:[#allocation5 + $0xd0] sm:$0xff] }
  0x3d   :  { %2049 = vst [vmem:[#allocation13_spill] sm:$0xff] %v1652_v63  ;;  %v366_v41 = vand.u32 4294901760, %v365_v53  ;;  %v1221_v43 = vpack.c.bf16 %v240_v59, %v233_v58  ;;  %1188 = vmatprep.subr.bf16.mxu0 %v1652_v63  ;;  %v161_v60 = vand.u32 4294901760, %v1647_v56  ;;  %v164_v1 = vand.u32 4294901760, %v1649_v57 }
  0x3e   :  { %v253_v48 = vsub.f32 %v1638_v50, %v1999_v62  ;;  %1220 = vmatprep.subr.bf16.mxu1 %v1219_v10  ;;  %v247_v52 = vand.u32 4294901760, %v246_v42  ;;  %v1671_v53 = vpack.c.bf16 %v104_v7, %v101_v6  ;;  %v113_v58 = vand.u32 4294901760, %v1654_v0 }
  0x3f   :  { %v1223_v51 = vpack.c.bf16 %v366_v41, %v359_v14  ;;  %1222 = vmatpush3.bf16.msra.mxu1 %v1221_v43  ;;  %v1675_v62 = vsub.f32 %v1647_v56, %v161_v60  ;;  %v1678_v55 = vsub.f32 %v1649_v57, %v164_v1  ;;  %v116_v24 = vand.u32 4294901760, %v1659_v45  ;;  %v1691_v56 = vld [vmem:[#allocation5 + $0x50] sm:$0xff] }
  0x40   :  { %2050 = vst [vmem:[#allocation14_spill] sm:$0xff] %v1671_v53  ;;  %v254_v59 = vand.u32 4294901760, %v253_v48  ;;  %1190 = vmatpush3.bf16.msra.mxu0 %v1671_v53  ;;  %v1683_v10 = vsub.f32 %v1654_v0, %v113_v58  ;;  %v1687_v6 = vpack.c.bf16 %v158_v12, %v155_v11  ;;  %v167_v7 = vand.u32 4294901760, %v1667_v47  ;;  %v1698_v0 = vld [vmem:[#allocation5 + $0x58] sm:$0xff] }
  0x41   :  { %1224 = vmatprep.subr.bf16.mxu1 %v1223_v51  ;;  %v170_v43 = vand.u32 4294901760, %v1669_v49  ;;  %v2020_v14 = vand.u32 4294901760, %v1675_v62  ;;  %v2019_v41 = vand.u32 4294901760, %v1678_v55  ;;  %v1696_v42 = vsub.f32 %v1659_v45, %v116_v24 }
  0x42   :  { %2051 = vst [vmem:[#allocation15_spill] sm:$0xff] %v1687_v6  ;;  %v1225_v57 = vpack.c.bf16 %v254_v59, %v247_v52  ;;  %v2018_v61 = vand.u32 4294901760, %v1683_v10  ;;  %1192 = vmatprep.subr.bf16.mxu0 %v1687_v6  ;;  %v1703_v11 = vsub.f32 %v1667_v47, %v167_v7  ;;  %v1710_v48 = vpack.c.bf16 %v110_v28, %v107_v39 }
  0x43   :  { %v1706_v12 = vsub.f32 %v1669_v49, %v170_v43  ;;  %v372_v45 = vsub.f32 %v1675_v62, %v2020_v14  ;;  %v379_v51 = vsub.f32 %v1678_v55, %v2019_v41  ;;  %v2014_v52 = vand.u32 4294901760, %v1696_v42 }
  0x44   :  { %2052 = vst [vmem:[#allocation16_spill] sm:$0xff] %v1710_v48  ;;  %1226 = vmatpush3.bf16.msra.mxu1 %v1225_v57  ;;  %v119_v47 = vand.u32 4294901760, %v1691_v56  ;;  %v260_v49 = vsub.f32 %v1683_v10, %v2018_v61  ;;  %v2013_v9 = vand.u32 4294901760, %v1703_v11  ;;  %1194 = vmatpush3.bf16.msra.mxu0 %v1710_v48  ;;  %v122_v28 = vand.u32 4294901760, %v1698_v0  ;;  %v70_v61 = vld [vmem:[#allocation5 + $0x70] sm:$0xff] }
  0x45   :  { %v2015_v39 = vand.u32 4294901760, %v1706_v12  ;;  %v373_v59 = vand.u32 4294901760, %v372_v45  ;;  %v380_v57 = vand.u32 4294901760, %v379_v51  ;;  %v267_v15 = vsub.f32 %v1696_v42, %v2014_v52  ;;  %v1744_v51 = vld [vmem:[#allocation5 + $0xe8] sm:$0xff] }
  0x46   :  { %v1731_v33 = vsub.f32 %v1691_v56, %v119_v47  ;;  %v261_v44 = vand.u32 4294901760, %v260_v49  ;;  %v386_v40 = vsub.f32 %v1703_v11, %v2013_v9  ;;  %v1742_v45 = vsub.f32 %v1698_v0, %v122_v28  ;;  %v1749_v49 = vld [vmem:[#allocation5 + $0x60] sm:$0xff] }
  0x47   :  { %v393_v35 = vsub.f32 %v1706_v12, %v2015_v39  ;;  %v1227_v34 = vpack.c.bf16 %v380_v57, %v373_v59  ;;  %v268_v31 = vand.u32 4294901760, %v267_v15  ;;  %v1747_v30 = vpack.c.bf16 %v164_v1, %v161_v60  ;;  %v69_v39 = vld [vmem:[#allocation5 + $0x68] sm:$0xff]  ;;  %v86_v1 = vld [vmem:[#allocation5 + $0xf0] sm:$0xff] }
  0x48   :  { %v2016_v56 = vand.u32 4294901760, %v1731_v33  ;;  %v387_v29 = vand.u32 4294901760, %v386_v40  ;;  %v2017_v9 = vand.u32 4294901760, %v1742_v45  ;;  %v173_v52 = vand.u32 4294901760, %v1733_v16 }
  0x49   :  { %2053 = vst [vmem:[#allocation17_spill] sm:$0xff] %v1747_v30  ;;  %v394_v25 = vand.u32 4294901760, %v393_v35  ;;  %1228 = vmatprep.subr.bf16.mxu1 %v1227_v34  ;;  %v1229_v0 = vpack.c.bf16 %v268_v31, %v261_v44  ;;  %1196 = vmatprep.subr.bf16.mxu0 %v1747_v30  ;;  %v176_v15 = vand.u32 4294901760, %v1744_v51  ;;  %v1758_v60 = vpack.c.bf16 %v116_v24, %v113_v58  ;;  %v87_v34 = vld [vmem:[#allocation5 + $0xf8] sm:$0xff] }
  0x4a   :  { %v274_v59 = vsub.f32 %v1731_v33, %v2016_v56  ;;  %v281_v35 = vsub.f32 %v1742_v45, %v2017_v9  ;;  %v1764_v57 = vsub.f32 %v1733_v16, %v173_v52  ;;  %v125_v31 = vand.u32 4294901760, %v1749_v49 }
  0x4b   :  { %2054 = vst [vmem:[#allocation18_spill] sm:$0xff] %v1758_v60  ;;  %v1231_v40 = vpack.c.bf16 %v394_v25, %v387_v29  ;;  %1230 = vmatpush3.bf16.msra.mxu1 %v1229_v0  ;;  %v1768_v56 = vsub.f32 %v1744_v51, %v176_v15  ;;  %1198 = vmatpush3.bf16.msra.mxu0 %v1758_v60  ;;  %v128_v24 = vand.u32 4294901760, %v69_v39  ;;  %v179_v9 = vand.u32 4294901760, %v86_v1 }
  0x4c   :  { %v275_v44 = vand.u32 4294901760, %v274_v59  ;;  %v1771_v58 = vpack.c.bf16 %v170_v43, %v167_v7  ;;  %v282_v25 = vand.u32 4294901760, %v281_v35  ;;  %v2023_v29 = vand.u32 4294901760, %v1764_v57  ;;  %v71_v7 = vld [vmem:[#allocation5 + $0x78] sm:$0xff] }
  0x4d   :  { %1232 = vmatprep.subr.bf16.mxu1 %v1231_v40  ;;  %v1775_v16 = vsub.f32 %v1749_v49, %v125_v31  ;;  %v2024_v0 = vand.u32 4294901760, %v1768_v56  ;;  %v1778_v59 = vsub.f32 %v69_v39, %v128_v24  ;;  %v182_v51 = vand.u32 4294901760, %v87_v34 }
  0x4e   :  { %2055 = vst [vmem:[#allocation19_spill] sm:$0xff] %v1771_v58  ;;  %1200 = vmatprep.subr.bf16.mxu0 %v1771_v58  ;;  %v1781_v41 = vpack.c.bf16 %v122_v28, %v119_v47  ;;  %v1233_v43 = vpack.c.bf16 %v282_v25, %v275_v44  ;;  %v400_v40 = vsub.f32 %v1764_v57, %v2023_v29  ;;  %v131_v47 = vand.u32 4294901760, %v70_v61 }
  0x4f   :  { %v2031_v49 = vand.u32 4294901760, %v1775_v16  ;;  %v1787_v35 = vsub.f32 %v86_v1, %v179_v9  ;;  %v407_v39 = vsub.f32 %v1768_v56, %v2024_v0  ;;  %v2038_v14 = vand.u32 4294901760, %v1778_v59 }
  0x50   :  { %2056 = vst [vmem:[#allocation20_spill] sm:$0xff] %v1781_v41  ;;  %v1793_v58 = vsub.f32 %v87_v34, %v182_v51  ;;  %1202 = vmatpush3.bf16.msra.mxu0 %v1781_v41  ;;  %1234 = vmatpush3.bf16.msra.mxu1 %v1233_v43  ;;  %v401_v28 = vand.u32 4294901760, %v400_v40  ;;  %v134_v25 = vand.u32 4294901760, %v71_v7  ;;  %v1804_v60 = vsub.f32 %v70_v61, %v131_v47 }
  0x51   :  { %v288_v44 = vsub.f32 %v1775_v16, %v2031_v49  ;;  %v413_v1 = vand.u32 4294901760, %v1787_v35  ;;  %v408_v29 = vand.u32 4294901760, %v407_v39  ;;  %v295_v0 = vsub.f32 %v1778_v59, %v2038_v14 }
  0x52   :  { %v420_v34 = vand.u32 4294901760, %v1793_v58  ;;  %v1807_v40 = vsub.f32 %v71_v7, %v134_v25  ;;  %v1809_v30 = vpack.c.bf16 %v176_v15, %v173_v52  ;;  %v301_v39 = vand.u32 4294901760, %v1804_v60 }
  0x53   :  { %v289_v41 = vand.u32 4294901760, %v288_v44  ;;  %v414_v43 = vsub.f32 %v1787_v35, %v413_v1  ;;  %v1235_v49 = vpack.c.bf16 %v408_v29, %v401_v28  ;;  %v296_v48 = vand.u32 4294901760, %v295_v0 }
  0x54   :  { %v421_v6 = vsub.f32 %v1793_v58, %v420_v34  ;;  %v308_v14 = vand.u32 4294901760, %v1807_v40  ;;  %1204 = vmatprep.subr.bf16.mxu0 %v1809_v30  ;;  %v1815_v61 = vpack.c.bf16 %v128_v24, %v125_v31  ;;  %v1817_v44 = vpack.c.bf16 %v182_v51, %v179_v9 }
  0x55   :  { %v415_v53 = vand.u32 4294901760, %v414_v43  ;;  %1236 = vmatprep.subr.bf16.mxu1 %v1235_v49  ;;  %v1237_v7 = vpack.c.bf16 %v296_v48, %v289_v41  ;;  %v302_v52 = vsub.f32 %v1804_v60, %v301_v39  ;;  %v1822_v29 = vpack.c.bf16 %v134_v25, %v131_v47 }
  0x56   :  { %v422_v63 = vand.u32 4294901760, %v421_v6  ;;  %v309_v15 = vsub.f32 %v1807_v40, %v308_v14  ;;  %1206 = vmatpush3.bf16.msra.mxu0 %v1815_v61  ;;  %v1245_v0 = vpack.c.bf16 %v1508_v23, %v1506_v22  ;;  %v1243_v6 = vpack.c.bf16 %v1504_v21, %v1500_v17 }
  0x57   :  { %1238 = vmatpush3.bf16.msra.mxu1 %v1237_v7  ;;  %v303_v24 = vand.u32 4294901760, %v302_v52  ;;  %1208 = vmatprep.subr.bf16.mxu0 %v1817_v44  ;;  %v1249_v41 = vpack.c.bf16 %v1531_v36, %v1523_v32  ;;  %v1251_v51 = vpack.c.bf16 %v1585_v13, %v1576_v3  ;;  %v1253_v49 = vpack.c.bf16 %v1597_v19, %v1594_v18 }
  0x58   :  { %v1239_v9 = vpack.c.bf16 %v422_v63, %v415_v53  ;;  %v310_v48 = vand.u32 4294901760, %v309_v15  ;;  %v1255_v63 = vpack.c.bf16 %v1611_v38, %v1608_v37  ;;  %v1257_v53 = vpack.c.bf16 %v1638_v50, %v1629_v46 }
  0x59   :  { %v1259_v28 = vpack.c.bf16 %v1678_v55, %v1675_v62  ;;  %v1261_v25 = vpack.c.bf16 %v1696_v42, %v1683_v10  ;;  %v1263_v43 = vpack.c.bf16 %v1706_v12, %v1703_v11  ;;  %v1265_v7 = vpack.c.bf16 %v1742_v45, %v1731_v33 }
  0x5a   :  { %1240 = vmatprep.subr.bf16.mxu1 %v1239_v9  ;;  %v1241_v47 = vpack.c.bf16 %v310_v48, %v303_v24  ;;  %1210 = vmatpush3.bf16.msra.mxu0 %v1822_v29  ;;  %v1267_v52 = vpack.c.bf16 %v1768_v56, %v1764_v57  ;;  %v2058_v48 = vand.u32 4294901760, %v1678_v55  ;;  %v2059_v31 = vand.u32 4294901760, %v1683_v10 }
  0x5b   :  { %1244 = vmatprep.subr.bf16.mxu0 %v1243_v6  ;;  %v2057_v6 = vand.u32 4294901760, %v1675_v62  ;;  %v2060_v50 = vand.u32 4294901760, %v1696_v42  ;;  %v2061_v15 = vand.u32 4294901760, %v1703_v11  ;;  %v2062_v38 = vand.u32 4294901760, %v1706_v12 }
  0x5c   :  { %1242 = vmatpush3.bf16.msra.mxu1 %v1241_v47  ;;  %v2063_v24 = vand.u32 4294901760, %v1731_v33  ;;  %v2064_v62 = vand.u32 4294901760, %v1742_v45  ;;  %v2065_v55 = vand.u32 4294901760, %v1764_v57  ;;  %v2066_v10 = vand.u32 4294901760, %v1768_v56 }
  0x5d   :  { %1276 = vmatprep.subr.bf16.mxu1 %v1560_v54  ;;  %v1863_v47 = vpack.c.bf16 %v2058_v48, %v2057_v6  ;;  %v1869_v46 = vpack.c.bf16 %v2060_v50, %v2059_v31  ;;  %v1875_v9 = vpack.c.bf16 %v2062_v38, %v2061_v15  ;;  %v2067_v50 = vand.u32 4294901760, %v1775_v16 }
  0x5e   :  { %v1881_v37 = vpack.c.bf16 %v2064_v62, %v2063_v24  ;;  %v1887_v6 = vpack.c.bf16 %v2066_v10, %v2065_v55  ;;  %v2068_v42 = vand.u32 4294901760, %v1778_v59  ;;  %v1895_v38 = vpack.c.bf16 %v420_v34, %v413_v1 }
  0x5f   :  { %v1897_v12 = vpack.c.bf16 %v308_v14, %v301_v39 }
  0x60   :  { %v1893_v11 = vpack.c.bf16 %v2068_v42, %v2067_v50  ;;  %v2069_v50 = vld [vmem:[#allocation13_spill] sm:$0xff]  ;;  %v2070_v42 = vld [vmem:[#allocation14_spill] sm:$0xff] }
  0xb7   :  { %v49_v33 = vpop.xlane.xlu0 %48 }
  0xb8   :  { %v50_v45 = vsub.f32 %v1492_v4, %v49_v33  ;;  %v51_v31 = vsub.f32 %v1494_v5, %v49_v33  ;;  %v2071_v33 = vpack.c.bf16 %v1514_v27, %v1512_v26 }
  0xba   :  { %v52_v57 = vmul.f32 1.442695, %v50_v45  ;;  %v54_v15 = vmul.f32 1.442695, %v51_v31  ;;  %v2072_v45 = vld [vmem:[#allocation15_spill] sm:$0xff]  ;;  %v2073_v31 = vld [vmem:[#allocation16_spill] sm:$0xff] }
  0xbc   :  { %1378 = vpow2.f32 %v52_v57  ;;  %v2074_v57 = vld [vmem:[#allocation17_spill] sm:$0xff] }
  0xbd   :  { %1380 = vpow2.f32 %v54_v15  ;;  %v2075_v15 = vld [vmem:[#allocation18_spill] sm:$0xff] }
  0xc6   :  { %v1379_v56 = vpop.eup %1378 }
  0xc7   :  { %v1381_v24 = vpop.eup %1380  ;;  %v1901_v48 = vand.u32 4294901760, %v1379_v56 }
  0xc8   :  { %v184_v62 = vand.u32 4294901760, %v1381_v24 }
  0xc9   :  { %v191_v55 = vsub.f32 %v1379_v56, %v1901_v48  ;;  %v2077_v56 = vld [vmem:[#allocation20_spill] sm:$0xff] }
  0xca   :  { %425 = vmatprep.mubr.f32.mxu1 %v184_v62  ;;  %v185_v1 = vsub.f32 %v1381_v24, %v184_v62 }
  0xcb   :  { %427 = vmatmul.mubr.f32.vlgmr.msra.gmra.mrb[0].mxu1 %v1901_v48  ;;  %v192_v14 = vand.u32 4294901760, %v191_v55 }
  0xcc   :  { %1278 = vmatpush3.bf16.msra.mxu1 %v1573_v2  ;;  %v186_v4 = vand.u32 4294901760, %v185_v1 }
  0xcd   :  { %1280 = vmatprep.subr.bf16.mxu1 %v1580_v8  ;;  %v193_v5 = vsub.f32 %v191_v55, %v192_v14 }
  0xce   :  { %669 = vmatprep.mubr.f32.mxu1 %v186_v4  ;;  %v187_v34 = vsub.f32 %v185_v1, %v186_v4 }
  0xcf   :  { %v194_v39 = vand.u32 4294901760, %v193_v5 }
  0xd0   :  { %1282 = vmatpush3.bf16.msra.mxu1 %v1602_v20  ;;  %v188_v10 = vand.u32 4294901760, %v187_v34 }
  0xd1   :  { %1284 = vmatprep.subr.bf16.mxu1 %v2069_v50 }
  0xd2   :  { %189 = vmatprep.mubr.f32.mxu0 %v188_v10 }
  0xd3   :  { %195 = vmatmul.mubr.f32.vlgmr.msra.gmra.mrb[0].mxu0 %v194_v39 }
  0xd4   :  { %1246 = vmatpush3.bf16.msra.mxu0 %v1245_v0  ;;  %1286 = vmatpush3.bf16.msra.mxu1 %v2070_v42  ;;  %v2076_v0 = vld [vmem:[#allocation19_spill] sm:$0xff] }
  0xd5   :  { %562 = vmatprep.mubr.f32.mxu0 %v185_v1  ;;  %1248 = vmatprep.subr.bf16.mxu0 %v2071_v33 }
  0xd6   :  { %1288 = vmatprep.subr.bf16.mxu1 %v2072_v45 }
  0xd8   :  { %1250 = vmatpush3.bf16.msra.mxu0 %v1249_v41  ;;  %1290 = vmatpush3.bf16.msra.mxu1 %v2073_v31  ;;  %v2078_v41 = vpack.c.bf16 %v1778_v59, %v1775_v16  ;;  %v2084_v16 = vand.u32 4294901760, %v1508_v23  ;;  %v2090_v23 = vand.u32 4294901760, %v1585_v13 }
  0xd9   :  { %1252 = vmatprep.subr.bf16.mxu0 %v1251_v51  ;;  %1292 = vmatprep.subr.bf16.mxu1 %v2074_v57  ;;  %v2079_v51 = vpack.c.bf16 %v1793_v58, %v1787_v35 }
  0xdc   :  { %1254 = vmatpush3.bf16.msra.mxu0 %v1253_v49  ;;  %1294 = vmatpush3.bf16.msra.mxu1 %v2075_v15  ;;  %v2080_v49 = vand.u32 4294901760, %v1500_v17  ;;  %v2085_v17 = vand.u32 4294901760, %v1512_v26  ;;  %v2091_v26 = vand.u32 4294901760, %v1594_v18 }
  0xdd   :  { %1256 = vmatprep.subr.bf16.mxu0 %v1255_v63  ;;  %1296 = vmatprep.subr.bf16.mxu1 %v2076_v0  ;;  %v2081_v63 = vand.u32 4294901760, %v1504_v21  ;;  %v2086_v21 = vand.u32 4294901760, %v1514_v27  ;;  %v2092_v27 = vand.u32 4294901760, %v1597_v19 }
  0xdf   :  { %v1311_v58 = vpack.c.bf16 %v2086_v21, %v2085_v17 }
  0xe0   :  { %1258 = vmatpush3.bf16.msra.mxu0 %v1257_v53  ;;  %1298 = vmatpush3.bf16.msra.mxu1 %v2077_v56  ;;  %v1307_v53 = vpack.c.bf16 %v2081_v63, %v2080_v49 }
  0xe1   :  { %1260 = vmatprep.subr.bf16.mxu0 %v1259_v28  ;;  %1300 = vmatprep.subr.bf16.mxu1 %v1809_v30  ;;  %v2095_v28 = vld [vmem:[#allocation10_spill] sm:$0xff] }
  0xe4   :  { %1262 = vmatpush3.bf16.msra.mxu0 %v1261_v25  ;;  %1302 = vmatpush3.bf16.msra.mxu1 %v1815_v61  ;;  %v2096_v25 = vand.u32 4294901760, %v2095_v28 }
  0xe5   :  { %1264 = vmatprep.subr.bf16.mxu0 %v1263_v43  ;;  %1304 = vmatprep.subr.bf16.mxu1 %v1817_v44 }
  0xe8   :  { %1266 = vmatpush3.bf16.msra.mxu0 %v1265_v7  ;;  %1306 = vmatpush3.bf16.msra.mxu1 %v1822_v29  ;;  %v2099_v7 = vld [vmem:[#allocation12_spill] sm:$0xff] }
  0xe9   :  { %1268 = vmatprep.subr.bf16.mxu0 %v1267_v52  ;;  %1340 = vmatprep.subr.bf16.mxu1 %v1560_v54  ;;  %v2082_v54 = vpack.c.bf16 %v1807_v40, %v1804_v60  ;;  %v1317_v40 = vpack.c.bf16 %v2092_v27, %v2091_v26  ;;  %v2100_v52 = vand.u32 4294901760, %v2099_v7 }
  0xeb   :  { %673 = vmatmul.mubr.f32.vlgmr.msra.gmra.mrb[2].mxu1 %v192_v14 }
  0xec   :  { %1270 = vmatpush3.bf16.msra.mxu0 %v2078_v41  ;;  %1342 = vmatpush3.bf16.msra.mxu1 %v1573_v2  ;;  %v2083_v2 = vand.u32 4294901760, %v1506_v22  ;;  %v2089_v22 = vand.u32 4294901760, %v1576_v3  ;;  %v2097_v3 = vld [vmem:[#allocation11_spill] sm:$0xff] }
  0xed   :  { %943 = vmatprep.mubr.f32.mxu1 %v184_v62  ;;  %1272 = vmatprep.subr.bf16.mxu0 %v2079_v51  ;;  %v2098_v13 = vand.u32 4294901760, %v2097_v3 }
  0xee   :  { %1344 = vmatprep.subr.bf16.mxu1 %v1580_v8  ;;  %v1309_v59 = vpack.c.bf16 %v2084_v16, %v2083_v2  ;;  %v2087_v8 = vand.u32 4294901760, %v1523_v32  ;;  %v1315_v35 = vpack.c.bf16 %v2090_v23, %v2089_v22  ;;  %v2093_v32 = vld [vmem:[#allocation9_spill] sm:$0xff] }
  0xef   :  { %v1321_v24 = vpack.c.bf16 %v2100_v52, %v2098_v13 }
  0xf0   :  { %1274 = vmatpush3.bf16.msra.mxu0 %v2082_v54  ;;  %1346 = vmatpush3.bf16.msra.mxu1 %v1602_v20  ;;  %v2088_v20 = vand.u32 4294901760, %v1531_v36  ;;  %v2094_v36 = vand.u32 4294901760, %v2093_v32 }
  0xf1   :  { %1308 = vmatprep.subr.bf16.mxu0 %v1307_v53  ;;  %1348 = vmatprep.subr.bf16.mxu1 %v2069_v50 }
  0xf2   :  { %v1313_v60 = vpack.c.bf16 %v2088_v20, %v2087_v8  ;;  %v1319_v43 = vpack.c.bf16 %v2096_v25, %v2094_v36 }
  0xf3   :  { %565 = vmatmul.mubr.f32.vlgmr.msra.gmra.mrb[2].mxu0 %v191_v55 }
  0xf4   :  { %1310 = vmatpush3.bf16.msra.mxu0 %v1309_v59  ;;  %839 = vmatprep.mubr.f32.mxu0 %v184_v62 }
  0xf5   :  { %1350 = vmatpush3.bf16.msra.mxu1 %v2070_v42  ;;  %1312 = vmatprep.subr.bf16.mxu0 %v1311_v58 }
  0xf6   :  { %1352 = vmatprep.subr.bf16.mxu1 %v2072_v45 }
  0xf8   :  { %1314 = vmatpush3.bf16.msra.mxu0 %v1313_v60 }
  0xf9   :  { %1354 = vmatpush3.bf16.msra.mxu1 %v2073_v31  ;;  %1316 = vmatprep.subr.bf16.mxu0 %v1315_v35 }
  0xfa   :  { %1356 = vmatprep.subr.bf16.mxu1 %v2074_v57 }
  0xfc   :  { %1318 = vmatpush3.bf16.msra.mxu0 %v1317_v40 }
  0xfd   :  { %1358 = vmatpush3.bf16.msra.mxu1 %v2075_v15  ;;  %1320 = vmatprep.subr.bf16.mxu0 %v1319_v43 }
  0xfe   :  { %1360 = vmatprep.subr.bf16.mxu1 %v2076_v0 }
 0x100   :  { %1322 = vmatpush3.bf16.msra.mxu0 %v1321_v24 }
 0x101   :  { %1362 = vmatpush3.bf16.msra.mxu1 %v2077_v56  ;;  %1324 = vmatprep.subr.bf16.mxu0 %v1863_v47 }
 0x102   :  { %1364 = vmatprep.subr.bf16.mxu1 %v1809_v30  ;;  %v1436_v30 = vmov 0  }
 0x103   :  { %1377 = vset.pattern.permute.xlu0 %v1436_v30 }
 0x104   :  { %1326 = vmatpush3.bf16.msra.mxu0 %v1869_v46 }
 0x105   :  { %1366 = vmatpush3.bf16.msra.mxu1 %v1815_v61  ;;  %1328 = vmatprep.subr.bf16.mxu0 %v1875_v9 }
 0x106   :  { %1368 = vmatprep.subr.bf16.mxu1 %v1817_v44 }
 0x108   :  { %1330 = vmatpush3.bf16.msra.mxu0 %v1881_v37 }
 0x109   :  { %1370 = vmatpush3.bf16.msra.mxu1 %v1822_v29  ;;  %1332 = vmatprep.subr.bf16.mxu0 %v1887_v6 }
 0x10c   :  { %945 = vmatmul.mubr.f32.vlgmr.msra.gmra.mrb[4].mxu1 %v1901_v48  ;;  %1334 = vmatpush3.bf16.msra.mxu0 %v1893_v11 }
 0x10d   :  { %1336 = vmatprep.subr.bf16.mxu0 %v1895_v38 }
 0x110   :  { %1338 = vmatpush3.bf16.msra.mxu0 %v1897_v12 }
 0x113   :  { %841 = vmatmul.mubr.f32.vlgmr.msra.gmra.mrb[4].mxu0 %v1901_v48 }
 0x19e   :  { %v1036_v18 = vpop.f32.mrb[0].mxu1 }
 0x19f   :  { %v1037_v19 = vpop.f32.mrb[1].mxu1 }
 0x1a0   :  { %v1038_v46 = vadd.f32 %v1037_v19, %v1036_v18 }
 0x1a6   :  { %v1001_v37 = vpop.f32.mrb[0].mxu0 }
 0x1a7   :  { %v1002_v61 = vpop.f32.mrb[1].mxu0 }
 0x1a8   :  { %v1003_v44 = vadd.f32 %v1002_v61, %v1001_v37 }
 0x1aa   :  { %v429_v29 = vadd.f32 %v1038_v46, %v1003_v44 }
 0x1be   :  { %v1106_v9 = vpop.f32.mrb[2].mxu1 }
 0x1bf   :  { %v1107_v47 = vpop.f32.mrb[3].mxu1 }
 0x1c0   :  { %v1108_v6 = vadd.f32 %v1107_v47, %v1106_v9 }
 0x1c6   :  { %v1071_v62 = vpop.f32.mrb[2].mxu0 }
 0x1c7   :  { %v1072_v11 = vpop.f32.mrb[3].mxu0 }
 0x1c8   :  { %v1073_v55 = vadd.f32 %v1072_v11, %v1071_v62 }
 0x1ca   :  { %v567_v38 = vadd.f32 %v1073_v55, %v429_v29 }
 0x1cc   :  { %v675_v1 = vadd.f32 %v1108_v6, %v567_v38 }
 0x1df   :  { %v1176_v12 = vpop.f32.mrb[4].mxu1 }
 0x1e0   :  { %v1177_v14 = vpop.f32.mrb[5].mxu1 }
 0x1e1   :  { %v1178_v48 = vadd.f32 %v1177_v14, %v1176_v12 }
 0x1e6   :  { %v1141_v4 = vpop.f32.mrb[4].mxu0 }
 0x1e7   :  { %v1142_v5 = vpop.f32.mrb[5].mxu0 }
 0x1e8   :  { %v1143_v34 = vadd.f32 %v1142_v5, %v1141_v4 }
 0x1ea   :  { %v843_v39 = vadd.f32 %v1143_v34, %v675_v1 }
 0x1ec   :  { %v947_v10 = vadd.f32 %v1178_v48, %v843_v39 }
 0x1ee   :  { %1382 = vrcp.f32 %v947_v10 }
 0x1f8   :  { %v1383_v50 = vpop.eup %1382 }
 0x1f9   :  { %953 = vperm.xlu0 %1377, %v1383_v50  }
 0x278   :  { %v954_v42 = vpop.permute.xlu0 %953 }
 0x279   :  { %v956_v33 = vmul.f32 %v954_v42, %v947_v10 }
 0x27b   :  { %958 = vrot.lane.b32.xlu1 %v956_v33, %s1437_s0 }
 0x2ed   :  { %v959_v45 = vpop.permute.xlu1 %958 }
 0x2ee   :  { %962 = vst.msk [vmem:[%s1996_s3] sm:$0xff] %vm961_vm0, %v959_v45 }
 0x2ef   :  { %967 = vsyncpa [#allocation4], 1 }
 0x2f0   :  { %968 = vsyncpa [#allocation6], 1 }

</bundles_post_ra>
